<compile_context>
chip_gen: v7x
topology: tpu7x:2x2x1
jax: 0.10.0
libtpu: 0.0.40
codegen_flags: <defaults>
</compile_context>

<pallas_src>
import math

import jax
import jax.numpy as jnp
from jax.experimental import pallas as pl
from jax.experimental.pallas import tpu as pltpu

_VMEM_LIMIT = 32 * 1024 * 1024  # safe on v5e/v6e (128 MiB) and v7x (64 MiB)


# ----------------------------------------------------------------------------
# helpers
# ----------------------------------------------------------------------------
def _pick_tile(dim: int, target: int, multiple: int = 8) -> int:
    """Largest tile <= target that divides `dim` and is a multiple of
    `multiple`; otherwise the full dim (full-extent blocks are exempt from the
    (8,128) tiling constraint)."""
    if dim <= target:
        return dim
    t = (target // multiple) * multiple
    while t >= multiple:
        if dim % t == 0:
            return t
        t -= multiple
    return dim


# ----------------------------------------------------------------------------
# LayerNorm kernel
# ----------------------------------------------------------------------------
def layernorm_pallas(x: jax.Array, gamma: jax.Array, beta: jax.Array,
                     eps: float = 1e-5) -> jax.Array:
    orig_shape = x.shape
    D = orig_shape[-1]
    x2 = x.reshape(-1, D)
    M = x2.shape[0]
    tm = _pick_tile(M, 1024, 8)          # HBM-bound: big row tiles
    grid = (M // tm,)

    def kernel(x_ref, g_ref, b_ref, o_ref):
        xv = x_ref[...].astype(jnp.float32)
        mu = jnp.mean(xv, axis=-1, keepdims=True)
        xc = xv - mu
        var = jnp.mean(xc * xc, axis=-1, keepdims=True)
        inv = jax.lax.rsqrt(var + eps)
        y = xc * inv * g_ref[...].astype(jnp.float32) + b_ref[...].astype(jnp.float32)
        o_ref[...] = y.astype(o_ref.dtype)

    out = pl.pallas_call(
        kernel,
        out_shape=jax.ShapeDtypeStruct((M, D), x.dtype),
        grid_spec=pltpu.PrefetchScalarGridSpec(
            num_scalar_prefetch=0,
            grid=grid,
            in_specs=[
                pl.BlockSpec((tm, D), lambda i: (i, 0)),
                pl.BlockSpec((1, D), lambda i: (0, 0)),
                pl.BlockSpec((1, D), lambda i: (0, 0)),
            ],
            out_specs=pl.BlockSpec((tm, D), lambda i: (i, 0)),
        ),
        compiler_params=pltpu.CompilerParams(
            dimension_semantics=("parallel",),
            vmem_limit_bytes=_VMEM_LIMIT),
    )(x2, gamma.reshape(1, D), beta.reshape(1, D))
    return out.reshape(orig_shape)


# ----------------------------------------------------------------------------
# Linear kernel: y = x @ w (+ bias) (-> GELU) (+ residual)
# MXU operands are cast to bf16; accumulation stays f32.
# ----------------------------------------------------------------------------
def linear_pallas(x: jax.Array, w: jax.Array, bias=None, activation=None,
                  residual=None) -> jax.Array:
    M, K = x.shape
    K2, N = w.shape
    assert K == K2
    tm = _pick_tile(M, 512, 8)
    tn = _pick_tile(N, 512, 128)     # lane dim: multiple of 128 or full extent
    tk = _pick_tile(K, 512, 128)     # lane dim of x-block: multiple of 128 or full
    grid = (M // tm, N // tn, K // tk)
    nk = grid[2]
    has_bias = bias is not None
    has_res = residual is not None

    def kernel(*refs):
        it = iter(refs)
        x_ref = next(it)
        w_ref = next(it)
        b_ref = next(it) if has_bias else None
        r_ref = next(it) if has_res else None
        o_ref = next(it)
        acc_ref = next(it)

        @pl.when(pl.program_id(2) == 0)
        def _():
            acc_ref[...] = jnp.zeros_like(acc_ref)

        acc_ref[...] += jnp.dot(x_ref[...].astype(jnp.bfloat16),
                                w_ref[...].astype(jnp.bfloat16),
                                preferred_element_type=jnp.float32)

        @pl.when(pl.program_id(2) == nk - 1)
        def _():
            r = acc_ref[...]
            if has_bias:
                r = r + b_ref[...].astype(jnp.float32)
            if activation == "gelu":
                # TODO(synk): PyTorch nn.GELU uses the exact erf form; the
                # tanh approximation is used here for robust TPU lowering.
                r = jax.nn.gelu(r, approximate=True)
            if has_res:
                r = r + r_ref[...].astype(jnp.float32)
            o_ref[...] = r.astype(o_ref.dtype)

    in_specs = [
        pl.BlockSpec((tm, tk), lambda i, j, k: (i, k)),
        pl.BlockSpec((tk, tn), lambda i, j, k: (k, j)),
    ]
    operands = [x, w]
    if has_bias:
        in_specs.append(pl.BlockSpec((1, tn), lambda i, j, k: (0, j)))
        operands.append(bias.reshape(1, N))
    if has_res:
        in_specs.append(pl.BlockSpec((tm, tn), lambda i, j, k: (i, j)))
        operands.append(residual)

    return pl.pallas_call(
        kernel,
        out_shape=jax.ShapeDtypeStruct((M, N), x.dtype),
        grid_spec=pltpu.PrefetchScalarGridSpec(
            num_scalar_prefetch=0,
            grid=grid,
            in_specs=in_specs,
            out_specs=pl.BlockSpec((tm, tn), lambda i, j, k: (i, j)),
            scratch_shapes=[pltpu.VMEM((tm, tn), jnp.float32)],
        ),
        compiler_params=pltpu.CompilerParams(
            dimension_semantics=("parallel", "parallel", "arbitrary"),
            vmem_limit_bytes=_VMEM_LIMIT),
    )(*operands)


# ----------------------------------------------------------------------------
# Head-packed flash attention:
#   q: (B, Nq, H*Dh), k/v: (B, Nk, H*Dh) -> (B, Nq, H*Dh)
# All heads of a (batch, q-tile) are handled inside one kernel invocation so
# the activations never need head split/merge transposes and the output store
# is a single lane-dense (tq, H*Dh) slab.
# ----------------------------------------------------------------------------
def flash_attention_pallas(q: jax.Array, k: jax.Array, v: jax.Array, *,
                           heads: int, dim_head: int, scale: float,
                           causal: bool) -> jax.Array:
    B, Nq, HD = q.shape
    Bk, Nk, HDk = k.shape
    assert HD == heads * dim_head and HDk == HD and Bk == B
    H, Dh = heads, dim_head
    tq = _pick_tile(Nq, 256, 8)
    tk = _pick_tile(Nk, 512, 8)
    grid = (B, Nq // tq, Nk // tk)
    nkv = grid[2]
    mask_value = -0.5 * float(jnp.finfo(jnp.float32).max)

    def kernel(q_ref, k_ref, v_ref, o_ref, m_sc, l_sc, acc_sc):
        qi = pl.program_id(1)
        ki = pl.program_id(2)

        @pl.when(ki == 0)
        def _():
            m_sc[...] = jnp.full_like(m_sc, -jnp.inf)
            l_sc[...] = jnp.zeros_like(l_sc)
            acc_sc[...] = jnp.zeros_like(acc_sc)

        def update():
            qb = q_ref[0]                       # (tq, H*Dh) f32
            kb = k_ref[0]                       # (tk, H*Dh) f32
            vb = v_ref[0]                       # (tk, H*Dh) f32
            if causal:
                row = jax.lax.broadcasted_iota(jnp.int32, (tq, tk), 0) + qi * tq
                col = jax.lax.broadcasted_iota(jnp.int32, (tq, tk), 1) + ki * tk
                keep = col <= row + (Nk - Nq)
            alphas, upds = [], []
            for h in range(H):
                sl = slice(h * Dh, (h + 1) * Dh)
                qh = qb[:, sl].astype(jnp.bfloat16)
                kh = kb[:, sl].astype(jnp.bfloat16)
                # contraction on last dims of both -> no explicit k transpose
                s = jax.lax.dot_general(
                    qh, kh, (((1,), (1,)), ((), ())),
                    preferred_element_type=jnp.float32) * scale   # (tq, tk)
                if causal:
                    s = jnp.where(keep, s, mask_value)
                m_prev = m_sc[h]                                    # (tq, 1)
                l_prev = l_sc[h]
                m_new = jnp.maximum(m_prev, jnp.max(s, axis=-1, keepdims=True))
                alpha = jnp.exp(m_prev - m_new)
                p = jnp.exp(s - m_new)
                l_sc[h] = alpha * l_prev + jnp.sum(p, axis=-1, keepdims=True)
                m_sc[h] = m_new
                pv = jax.lax.dot_general(
                    p.astype(jnp.bfloat16), vb[:, sl].astype(jnp.bfloat16),
                    (((1,), (0,)), ((), ())),
                    preferred_element_type=jnp.float32)             # (tq, Dh)
                alphas.append(jnp.broadcast_to(alpha, (tq, Dh)))
                upds.append(pv)
            alpha_full = alphas[0] if H == 1 else jnp.concatenate(alphas, axis=-1)
            upd_full = upds[0] if H == 1 else jnp.concatenate(upds, axis=-1)
            acc_sc[...] = alpha_full * acc_sc[...] + upd_full

        if causal:
            # Skip kv tiles that are fully masked for this q tile.
            pl.when(ki * tk <= qi * tq + (tq - 1) + (Nk - Nq))(update)
        else:
            update()

        @pl.when(ki == nkv - 1)
        def _():
            invs = []
            for h in range(H):
                l_h = l_sc[h]
                l_h = jnp.where(l_h == 0.0, 1.0, l_h)   # guard fully-skipped rows
                invs.append(jnp.broadcast_to(pl.reciprocal(l_h, approx=True),
                                             (tq, Dh)))
            inv_full = invs[0] if H == 1 else jnp.concatenate(invs, axis=-1)
            o_ref[0] = (acc_sc[...] * inv_full).astype(o_ref.dtype)

    return pl.pallas_call(
        kernel,
        out_shape=jax.ShapeDtypeStruct((B, Nq, HD), q.dtype),
        grid_spec=pltpu.PrefetchScalarGridSpec(
            num_scalar_prefetch=0,
            grid=grid,
            in_specs=[
                pl.BlockSpec((1, tq, HD), lambda b, qi, ki: (b, qi, 0)),
                pl.BlockSpec((1, tk, HD), lambda b, qi, ki: (b, ki, 0)),
                pl.BlockSpec((1, tk, HD), lambda b, qi, ki: (b, ki, 0)),
            ],
            out_specs=pl.BlockSpec((1, tq, HD), lambda b, qi, ki: (b, qi, 0)),
            scratch_shapes=[
                pltpu.VMEM((H, tq, 1), jnp.float32),   # running max per head
                pltpu.VMEM((H, tq, 1), jnp.float32),   # running sum per head
                pltpu.VMEM((tq, HD), jnp.float32),     # lane-dense accumulator
            ],
        ),
        compiler_params=pltpu.CompilerParams(
            dimension_semantics=("parallel", "parallel", "arbitrary"),
            vmem_limit_bytes=_VMEM_LIMIT),
    )(q, k, v)


# ----------------------------------------------------------------------------
# Full Transformer forward (Pallas-kernel composition)
# ----------------------------------------------------------------------------
def transformer_forward(x, params, *, heads, dim_head, causal=False,
                        norm_out=False, context=None, mask=None):
    # TODO(synk): optional padding `mask` argument is not implemented (the test
    # exercises mask=None, matching the module default).
    assert mask is None
    B, N, D = x.shape
    inner = heads * dim_head
    scale = dim_head ** -0.5

    for lp in params["layers"]:
        # ---- PreNormResidual(Attention) ----
        h = layernorm_pallas(x, lp["attn_ln_g"], lp["attn_ln_b"])
        h2 = h.reshape(B * N, D)
        if context is None:
            # fused q/kv projection: one matmul, one read of h2
            qkv = linear_pallas(h2, lp["wqkv"])                 # (B*N, 3*inner)
            q = qkv[:, :inner]
            k = qkv[:, inner:2 * inner]
            v = qkv[:, 2 * inner:]
            n_kv = N
        else:
            Bc, Nc, Dc = context.shape
            q = linear_pallas(h2, lp["wqkv"][:, :inner])
            kv = linear_pallas(context.reshape(Bc * Nc, Dc), lp["wqkv"][:, inner:])
            k = kv[:, :inner]
            v = kv[:, inner:]
            n_kv = Nc
        # head-packed layout (B, seq, H*Dh): no split/merge transposes needed
        qh = q.reshape(B, N, inner)
        kh = k.reshape(B, n_kv, inner)
        vh = v.reshape(B, n_kv, inner)
        o = flash_attention_pallas(qh, kh, vh, heads=heads, dim_head=dim_head,
                                   scale=scale, causal=causal)
        x = linear_pallas(o.reshape(B * N, inner), lp["wo"], bias=lp["bo"],
                          residual=x.reshape(B * N, D)).reshape(B, N, D)

        # ---- PreNormResidual(FeedForward) ----
        h = layernorm_pallas(x, lp["ff_ln_g"], lp["ff_ln_b"])
        h2 = linear_pallas(h.reshape(B * N, D), lp["w1"], bias=lp["b1"],
                           activation="gelu")
        x = linear_pallas(h2, lp["w2"], bias=lp["b2"],
                          residual=x.reshape(B * N, D)).reshape(B, N, D)

    if norm_out:
        x = layernorm_pallas(x, params["out_ln_g"], params["out_ln_b"])
    return x


# ----------------------------------------------------------------------------
# Pure-JAX reference (same math; optional bf16 MXU-operand casting to match
# the kernel's MXU numerics)
# ----------------------------------------------------------------------------
def transformer_ref(x, params, *, heads, dim_head, causal=False,
                    norm_out=False, mxu_dtype=jnp.float32):
    def cast(t):
        return t.astype(mxu_dtype)

    def ln(t, g, b, eps=1e-5):
        mu = t.mean(-1, keepdims=True)
        var = ((t - mu) ** 2).mean(-1, keepdims=True)
        return (t - mu) / jnp.sqrt(var + eps) * g + b

    B, N, D = x.shape
    inner = heads * dim_head
    scale = dim_head ** -0.5
    for lp in params["layers"]:
        h = ln(x, lp["attn_ln_g"], lp["attn_ln_b"])
        qkv = jnp.einsum("bnd,de->bne", cast(h), cast(lp["wqkv"]),
                         preferred_element_type=jnp.float32)
        q = qkv[..., :inner]
        k = qkv[..., inner:2 * inner]
        v = qkv[..., 2 * inner:]

        def split(t):
            return t.reshape(B, N, heads, dim_head).transpose(0, 2, 1, 3)

        qh, kh, vh = split(q), split(k), split(v)
        sim = jnp.einsum("bhid,bhjd->bhij", cast(qh), cast(kh),
                         preferred_element_type=jnp.float32) * scale
        if causal:
            i, j = sim.shape[-2:]
            cm = jnp.triu(jnp.ones((i, j), dtype=bool), j - i + 1)
            sim = jnp.where(cm, -0.5 * jnp.finfo(jnp.float32).max, sim)
        attn = jax.nn.softmax(sim, axis=-1)
        o = jnp.einsum("bhij,bhjd->bhid", cast(attn), cast(vh),
                       preferred_element_type=jnp.float32)
        o = o.transpose(0, 2, 1, 3).reshape(B, N, inner)
        x = jnp.einsum("bni,id->bnd", cast(o), cast(lp["wo"]),
                       preferred_element_type=jnp.float32) + lp["bo"] + x

        h = ln(x, lp["ff_ln_g"], lp["ff_ln_b"])
        h = jax.nn.gelu(
            jnp.einsum("bnd,dh->bnh", cast(h), cast(lp["w1"]),
                       preferred_element_type=jnp.float32) + lp["b1"],
            approximate=True)
        x = jnp.einsum("bnh,hd->bnd", cast(h), cast(lp["w2"]),
                       preferred_element_type=jnp.float32) + lp["b2"] + x
    if norm_out:
        x = ln(x, params["out_ln_g"], params["out_ln_b"])
    return x


# ----------------------------------------------------------------------------
# Parameter init + test
# ----------------------------------------------------------------------------
def init_params(key, dim, depth, heads, dim_head, ff_mult, norm_out):
    inner = heads * dim_head
    hidden = dim * ff_mult
    layers = []
    for _ in range(depth):
        key, *ks = jax.random.split(key, 13)
        wq = jax.random.normal(ks[2], (dim, inner), jnp.float32) / math.sqrt(dim)
        wkv = jax.random.normal(ks[3], (dim, 2 * inner), jnp.float32) / math.sqrt(dim)
        layers.append(dict(
            attn_ln_g=1.0 + 0.1 * jax.random.normal(ks[0], (dim,), jnp.float32),
            attn_ln_b=0.05 * jax.random.normal(ks[1], (dim,), jnp.float32),
            wqkv=jnp.concatenate([wq, wkv], axis=1),          # fused projection
            wo=jax.random.normal(ks[4], (inner, dim), jnp.float32) / math.sqrt(inner),
            bo=0.02 * jax.random.normal(ks[5], (dim,), jnp.float32),
            ff_ln_g=1.0 + 0.1 * jax.random.normal(ks[6], (dim,), jnp.float32),
            ff_ln_b=0.05 * jax.random.normal(ks[7], (dim,), jnp.float32),
            w1=jax.random.normal(ks[8], (dim, hidden), jnp.float32) / math.sqrt(dim),
            b1=0.02 * jax.random.normal(ks[9], (hidden,), jnp.float32),
            w2=jax.random.normal(ks[10], (hidden, dim), jnp.float32) / math.sqrt(hidden),
            b2=0.02 * jax.random.normal(ks[11], (dim,), jnp.float32),
        ))
    params = {"layers": layers}
    if norm_out:
        key, k1, k2 = jax.random.split(key, 3)
        params["out_ln_g"] = 1.0 + 0.1 * jax.random.normal(k1, (dim,), jnp.float32)
        params["out_ln_b"] = 0.05 * jax.random.normal(k2, (dim,), jnp.float32)
    return params


if __name__ == "__main__":
    key = jax.random.PRNGKey(0)
    B, N, dim = 2, 8, 32
    heads, dim_head, depth, ff_mult = 2, 16, 2, 4
    norm_out = True

    key, kx, kp = jax.random.split(key, 3)
    x = jax.random.normal(kx, (B, N, dim), dtype=jnp.float32)
    params = init_params(kp, dim, depth, heads, dim_head, ff_mult, norm_out)

    for causal in (False, True):
        out = transformer_forward(x, params, heads=heads, dim_head=dim_head,
                                  causal=causal, norm_out=norm_out)
        out = jax.block_until_ready(out)
        # Reference matches the kernel's MXU numerics (bf16 operands, f32 acc).
        ref = transformer_ref(x, params, heads=heads, dim_head=dim_head,
                              causal=causal, norm_out=norm_out,
                              mxu_dtype=jnp.bfloat16)
        assert out.shape == (B, N, dim), out.shape
        assert out.dtype == x.dtype, out.dtype
        err = float(jnp.max(jnp.abs(out - ref)))
        assert jnp.allclose(out, ref, atol=3e-2, rtol=3e-2), (causal, err)

    print("KERNEL_OK")
</pallas_src>

<mosaic_0001>
module attributes {stable_mosaic.version = 11 : i64} {
  func.func @kernel(%arg0: i32, %arg1: memref<16x32xf32, #tpu.memory_space<vmem>>, %arg2: memref<1x32xf32, #tpu.memory_space<vmem>>, %arg3: memref<1x32xf32, #tpu.memory_space<vmem>>, %arg4: memref<16x32xf32, #tpu.memory_space<vmem>>) attributes {dimension_semantics = [#tpu.dimension_semantics<parallel>], iteration_bounds = array<i64: 1>, scalar_prefetch = 0 : i64, scratch_operands = 0 : i64, tpu.core_type = #tpu.core_type<tc>, window_params = [{transform_indices = @transform_0, window_bounds = array<i64: 16, 32>}, {pipeline_mode = #tpu.pipeline_mode<synchronous>, transform_indices = @transform_1, window_bounds = array<i64: 1, 32>}, {pipeline_mode = #tpu.pipeline_mode<synchronous>, transform_indices = @transform_2, window_bounds = array<i64: 1, 32>}, {transform_indices = @transform_3, window_bounds = array<i64: 16, 32>}]} {
    %c0 = arith.constant 0 : index
    %c0_0 = arith.constant 0 : index
    %0 = vector.load %arg1[%c0, %c0_0] : memref<16x32xf32, #tpu.memory_space<vmem>>, vector<16x32xf32>
    %cst = arith.constant dense<0.000000e+00> : vector<16xf32>
    %1 = vector.multi_reduction <add>, %0, %cst [1] : vector<16x32xf32> to vector<16xf32>
    %2 = vector.shape_cast %1 : vector<16xf32> to vector<16x1xf32>
    %cst_1 = arith.constant 3.200000e+01 : f32
    %3 = vector.broadcast %cst_1 : f32 to vector<16x1xf32>
    %4 = arith.divf %2, %3 : vector<16x1xf32>
    %5 = vector.broadcast %4 : vector<16x1xf32> to vector<16x32xf32>
    %6 = arith.subf %0, %5 : vector<16x32xf32>
    %7 = arith.mulf %6, %6 : vector<16x32xf32>
    %cst_2 = arith.constant dense<0.000000e+00> : vector<16xf32>
    %8 = vector.multi_reduction <add>, %7, %cst_2 [1] : vector<16x32xf32> to vector<16xf32>
    %9 = vector.shape_cast %8 : vector<16xf32> to vector<16x1xf32>
    %cst_3 = arith.constant 3.200000e+01 : f32
    %10 = vector.broadcast %cst_3 : f32 to vector<16x1xf32>
    %11 = arith.divf %9, %10 : vector<16x1xf32>
    %cst_4 = arith.constant 9.99999974E-6 : f32
    %12 = vector.broadcast %cst_4 : f32 to vector<16x1xf32>
    %13 = arith.addf %11, %12 : vector<16x1xf32>
    %14 = math.rsqrt %13 : vector<16x1xf32>
    %15 = vector.broadcast %14 : vector<16x1xf32> to vector<16x32xf32>
    %16 = arith.mulf %6, %15 : vector<16x32xf32>
    %c0_5 = arith.constant 0 : index
    %c0_6 = arith.constant 0 : index
    %17 = vector.load %arg2[%c0_5, %c0_6] : memref<1x32xf32, #tpu.memory_space<vmem>>, vector<1x32xf32>
    %18 = vector.broadcast %17 : vector<1x32xf32> to vector<16x32xf32>
    %19 = arith.mulf %16, %18 : vector<16x32xf32>
    %c0_7 = arith.constant 0 : index
    %c0_8 = arith.constant 0 : index
    %20 = vector.load %arg3[%c0_7, %c0_8] : memref<1x32xf32, #tpu.memory_space<vmem>>, vector<1x32xf32>
    %21 = vector.broadcast %20 : vector<1x32xf32> to vector<16x32xf32>
    %22 = arith.addf %19, %21 : vector<16x32xf32>
    %c0_9 = arith.constant 0 : index
    %c0_10 = arith.constant 0 : index
    %23 = vector.load %arg4[%c0_9, %c0_10] : memref<16x32xf32, #tpu.memory_space<vmem>>, vector<16x32xf32>
    tpu.vector_store %arg4[%c0_9, %c0_10], %22 {strides = array<i32>} : memref<16x32xf32, #tpu.memory_space<vmem>>, vector<16x32xf32>,
    return
  }
  func.func @transform_0(%arg0: i32) -> (i32, i32) {
    %c0_i32 = arith.constant 0 : i32
    %c0_i32_0 = arith.constant 0 : i32
    return %arg0, %c0_i32 : i32, i32
  }
  func.func @transform_1(%arg0: i32) -> (i32, i32) {
    %c0_i32 = arith.constant 0 : i32
    %c0_i32_0 = arith.constant 0 : i32
    %c0_i32_1 = arith.constant 0 : i32
    return %c0_i32, %c0_i32_0 : i32, i32
  }
  func.func @transform_2(%arg0: i32) -> (i32, i32) {
    %c0_i32 = arith.constant 0 : i32
    %c0_i32_0 = arith.constant 0 : i32
    %c0_i32_1 = arith.constant 0 : i32
    return %c0_i32, %c0_i32_0 : i32, i32
  }
  func.func @transform_3(%arg0: i32) -> (i32, i32) {
    %c0_i32 = arith.constant 0 : i32
    %c0_i32_0 = arith.constant 0 : i32
    return %arg0, %c0_i32 : i32, i32
  }
}

</mosaic_0001>

<bundles_post_ra>
// kernel: tpu_custom_call.1
= control target key start
LH: loop header
LB: loop body
LE: loop exit
PB: predicated region body
PF: predicated region fallthrough
CT: control target
= control target key end

     0   :  { %8 = vsyncpa [#allocation3], 0  ;;  %s220_s0 = inlined_call_operand.hbm [shape: f32[16,32], index: 0, kind: input, shape index: {}]   ;;  %s221_s1 = inlined_call_operand.vmem [shape: f32[1,32], index: 1, kind: input, shape index: {}]   ;;  %s222_s2 = inlined_call_operand.vmem [shape: f32[1,32], index: 2, kind: input, shape index: {}]   ;;  %s223_s3 = inlined_call_operand.hbm [shape: f32[16,32], index: 3, kind: output, shape index: {}]  }
   0x1   :  { %9 = vsyncpa [#allocation4], 0  ;;  %s154_s12 = smov [#allocation2]   ;;  %s106_s16 = scalar_lea.hbm %s220_s0, 256 }
   0x2   :  { %s15_s13 = sshll.u32 %s154_s12, 4  ;;  %p107_p0 = scmp.ne.s32.totalorder %s220_s0, %s106_s16  ;;  %s16_s13 = int_to_ptr.vmem [resolvable:$true] %s15_s13 }
   0x3   :  { %p110_p1 = scmp.lt.u32.totalorder %s106_s16, %s220_s0 }
   0x5   :  { %p112_p2 = pnand %p110_p1, %p107_p0 }
   0x7   :  { %115 = shalt.err (!%p112_p2)
}
   0x8   :  { %s116_s21 = scalar_lea.vmem %s16_s13, 256  ;;  %p121_p4 = scmp.lt.s32.totalorder %s16_s13, %s16_s13 }
   0x9   :  { %p117_p3 = scmp.ne.s32.totalorder %s16_s13, %s116_s21  ;;  %p122_p5 = scmp.lt.s32.totalorder %s116_s21, %s116_s21 }
   0xb   :  { %p123_p6 = por %p122_p5, %p121_p4 }
   0xd   :  { %p124_p7 = pnand %p123_p6, %p117_p3 }
   0xf   :  { %127 = shalt.err (!%p124_p7)
}
  0x10   :  { %s155_s22 = smov 128   ;;  %s156_s23 = smov 8  }
  0x11   :  { %21 = dma.hbm_to_vmem [thread:$0]  %s220_s0, 256, %s16_s13, [#allocation3], %s155_s22, %s155_s22, %s156_s23  }
  0x12   :  { %150 = dma.done.wait [#allocation3], 256  }
  0x13   :  { %151 = vsyncadd [#allocation3], 4294967040  ;;  %vm31_vm0 = vcmask 261120   ;;  %v29_v0 = vld [vmem:[#allocation2] sm:$0xff]  ;;  %v30_v1 = vld [vmem:[#allocation2 + $0x8] sm:$0xff]  ;;  %s157_s29 = smov [#allocation5]  }
  0x14   :  { %v32_v2 = vsel %vm31_vm0, %v29_v0, 0.0  ;;  %v35_v3 = vsel %vm31_vm0, %v30_v1, 0.0  ;;  %v96_v21 = vld [vmem:[%s221_s1] ss:$0 sm:$0xff]  ;;  %s84_s30 = sshll.u32 %s157_s29, 4  ;;  %s85_s30 = int_to_ptr.vmem [resolvable:$true] %s84_s30 }
  0x15   :  { %33 = vadd.xlane.f32.xlu0 %v32_v2  ;;  %v97_v23 = vld [vmem:[%s222_s2] ss:$0 sm:$0xff]  ;;  %s128_s4 = scalar_lea.vmem %s85_s30, 256  ;;  %p133_p9 = scmp.lt.s32.totalorder %s85_s30, %s85_s30 }
  0x16   :  { %p129_p8 = scmp.ne.s32.totalorder %s85_s30, %s128_s4  ;;  %p134_p10 = scmp.lt.s32.totalorder %s128_s4, %s128_s4 }
  0x18   :  { %p135_p11 = por %p134_p10, %p133_p9 }
  0x19   :  { %36 = vadd.xlane.f32.xlu0 %v35_v3 }
  0x1a   :  { %p136_p12 = pnand %p135_p11, %p129_p8 }
  0xa2   :  { %v34_v4 = vpop.xlane.xlu0 %33 }
  0xa3   :  { %v39_v5 = vmul.f32 0.03125, %v34_v4 }
  0xa5   :  { %v41_v6 = vsub.f32 %v29_v0, %v39_v5 }
  0xa6   :  { %v37_v7 = vpop.xlane.xlu0 %36 }
  0xa7   :  { %v40_v8 = vmul.f32 0.03125, %v37_v7  ;;  %v43_v9 = vmul.f32 %v41_v6, %v41_v6 }
  0xa9   :  { %v42_v10 = vsub.f32 %v30_v1, %v40_v8  ;;  %v45_v11 = vsel %vm31_vm0, %v43_v9, 0.0 }
  0xaa   :  { %46 = vadd.xlane.f32.xlu1 %v45_v11 }
  0xab   :  { %v44_v12 = vmul.f32 %v42_v10, %v42_v10 }
  0xad   :  { %v48_v13 = vsel %vm31_vm0, %v44_v12, 0.0 }
  0xae   :  { %49 = vadd.xlane.f32.xlu1 %v48_v13 }
 0x137   :  { %v47_v14 = vpop.xlane.xlu1 %46 }
 0x138   :  { %v51_v15 = vmul.f32 0.03125, %v47_v14 }
 0x13a   :  { %v53_v16 = vadd.f32 1e-05, %v51_v15 }
 0x13b   :  { %v50_v17 = vpop.xlane.xlu1 %49 }
 0x13c   :  { %102 = vrsqrt.f32 %v53_v16  ;;  %v52_v18 = vmul.f32 0.03125, %v50_v17 }
 0x13e   :  { %v54_v19 = vadd.f32 1e-05, %v52_v18 }
 0x140   :  { %104 = vrsqrt.f32 %v54_v19 }
 0x146   :  { %v103_v20 = vpop.eup %102 }
 0x147   :  { %v57_v22 = vmul.f32 %v103_v20, %v41_v6 }
 0x149   :  { %v66_v24 = vmul.f32 %v96_v21, %v57_v22 }
 0x14a   :  { %v105_v25 = vpop.eup %104 }
 0x14b   :  { %v58_v26 = vmul.f32 %v105_v25, %v42_v10  ;;  %v75_v27 = vadd.f32 %v97_v23, %v66_v24 }
 0x14d   :  { %v67_v28 = vmul.f32 %v96_v21, %v58_v26  ;;  %77 = vst.msk [vmem:[#allocation5] sm:$0xff] %vm31_vm0, %v75_v27 }
 0x14f   :  { %v76_v29 = vadd.f32 %v97_v23, %v67_v28 }
 0x151   :  { %78 = vst.msk [vmem:[#allocation5 + $0x8] sm:$0xff] %vm31_vm0, %v76_v29 }
 0x152   :  { %139 = shalt.err (!%p136_p12)
}
 0x153   :  { %s140_s5 = scalar_lea.hbm %s223_s3, 256 }
 0x154   :  { %p141_p13 = scmp.ne.s32.totalorder %s223_s3, %s140_s5  ;;  %p144_p0 = scmp.lt.u32.totalorder %s140_s5, %s223_s3 }
 0x156   :  { %p146_p1 = pnand %p144_p0, %p141_p13 }
 0x158   :  { %149 = shalt.err (!%p146_p1)
}
 0x159   :  { %90 = dma.vmem_to_hbm [thread:$0]  %s85_s30, 256, %s223_s3, [#allocation4], %s155_s22, %s155_s22, %s156_s23  }
 0x15a   :  { %152 = dma.done.wait [#allocation4], 256  }
 0x15b   :  { %153 = vsyncadd [#allocation4], 4294967040 }
 0x15c   :  { %94 = vsyncpa [#allocation3], 1 }
 0x15d   :  { %95 = vsyncpa [#allocation4], 1 }

</bundles_post_ra>
